<compile_context>
chip_gen: v6e
topology: v6e:2x2x1
jax: 0.10.0
libtpu: 0.0.40
codegen_flags: <defaults>
</compile_context>

<pallas_src>
import math

import jax
import jax.numpy as jnp
from jax.experimental import pallas as pl
from jax.experimental.pallas import tpu as pltpu


_TWO_PI = 2.0 * math.pi
_INV_TWO_PI = 1.0 / _TWO_PI
_TWO_PI_HI = 6.28125                    # 201/32, exact in float32
_TWO_PI_LO = _TWO_PI - _TWO_PI_HI       # low part of 2*pi


def _sinusoidal_kernel(x_ref, table_ref, shift_ref, out_ref):
    # x_ref:     (TILE_B, 1)   raw timesteps
    # table_ref: (1, dim)      [freqs, freqs] with rescale_steps/num_steps folded in
    # shift_ref: (1, dim)      [0,...,0, pi/2,...,pi/2]  (cos(x) = sin(x + pi/2))
    # out_ref:   (TILE_B, dim) single lane-dense store
    phase = x_ref[...] * table_ref[...] + shift_ref[...]       # (TILE_B, dim)

    # Cody-Waite style range reduction: keeps f32 sin accurate even when the
    # phase reaches ~rescale_steps (thousands of radians). VPU-only, cheap.
    n = jnp.floor(phase * _INV_TWO_PI + 0.5)
    r = (phase - n * _TWO_PI_HI) - n * _TWO_PI_LO              # |r| <= pi

    out_ref[...] = jnp.sin(r).astype(out_ref.dtype)


def _round_up(a, b):
    return (a + b - 1) // b * b


def _reference(x, num_steps, dim, rescale_steps=4000):
    # Pure-JAX mirror of the PyTorch forward (fuses into the consumer).
    x = x.astype(jnp.float32) / float(num_steps) * float(rescale_steps)
    half_dim = dim // 2
    emb = math.log(10000.0) / (half_dim - 1)
    emb = jnp.exp(jnp.arange(half_dim, dtype=jnp.float32) * -emb)
    emb = x[:, None] * emb[None, :]
    return jnp.concatenate([jnp.sin(emb), jnp.cos(emb)], axis=-1)


def sinusoidal_pos_emb(x, *, num_steps, dim, rescale_steps=4000,
                       out_dtype=jnp.float32, use_pallas=None):
    """JAX/Pallas equivalent of SinusoidalPosEmb.forward.

    x: (B,) timesteps -> (B, dim) embeddings ([:, :dim//2]=sin, rest cos).
    """
    assert dim % 2 == 0 and dim >= 4, "dim must be even and >= 4"
    B = x.shape[0]
    half_dim = dim // 2

    # Two-term range reduction stays exact while n*_TWO_PI_HI is exact in f32.
    assert float(rescale_steps) / float(num_steps) * float(num_steps) < 4.0e5, \
        "phase too large for two-term Cody-Waite reduction"

    # Size-based dispatch: for small problems the fused pure-JAX path beats a
    # pallas_call launch + grid-step overhead.
    if use_pallas is None:
        use_pallas = B * dim >= (1 << 20)
    if not use_pallas:
        return _reference(x, num_steps, dim, rescale_steps).astype(out_dtype)

    x = x.astype(jnp.float32)

    # Hoisted tables (identical math to the PyTorch module), rescale folded in.
    scale = -math.log(10000.0) / float(half_dim - 1)
    freqs = jnp.exp(jnp.arange(half_dim, dtype=jnp.float32) * scale)
    freqs = freqs * (float(rescale_steps) / float(num_steps))
    table = jnp.concatenate([freqs, freqs]).reshape(1, dim)
    shift = jnp.concatenate(
        [jnp.zeros((half_dim,), jnp.float32),
         jnp.full((half_dim,), 0.5 * math.pi, jnp.float32)]).reshape(1, dim)

    out_bytes = jnp.dtype(out_dtype).itemsize
    row_mult = 16 if out_bytes < 4 else 8          # sublane tile (16 for bf16, 8 for f32)

    # Per-output-buffer cap ~4 MiB: double-buffered output = 8 MiB, comfortably
    # under the v5e 16 MiB scoped-VMEM default (v6e/v7x: 32 MiB).
    max_tile_rows = max(row_mult,
                        ((4 * 1024 * 1024) // (dim * out_bytes)) // row_mult * row_mult)

    b_min = _round_up(B, row_mult)
    if b_min <= max_tile_rows:
        # Whole batch fits in one tile: split into >= 2 grid steps (when the
        # batch is big enough) so "parallel" can use both TensorCores on v7x.
        tile_b = _round_up(pl.cdiv(b_min, 2), row_mult) if b_min > row_mult else row_mult
    else:
        tile_b = max_tile_rows

    # Pad ragged tail so every block is full; slice back afterwards.
    b_pad = _round_up(B, tile_b)
    if b_pad != B:
        x = jnp.pad(x, (0, b_pad - B))
    x2d = x.reshape(b_pad, 1)
    grid = (b_pad // tile_b,)

    out = pl.pallas_call(
        _sinusoidal_kernel,
        out_shape=jax.ShapeDtypeStruct((b_pad, dim), out_dtype),
        grid=grid,
        in_specs=[
            pl.BlockSpec((tile_b, 1), lambda i: (i, 0)),   # timesteps tile
            pl.BlockSpec((1, dim), lambda i: (0, 0)),      # freq table (constant block)
            pl.BlockSpec((1, dim), lambda i: (0, 0)),      # phase shift (constant block)
        ],
        out_specs=pl.BlockSpec((tile_b, dim), lambda i: (i, 0)),
        compiler_params=pltpu.CompilerParams(
            dimension_semantics=("parallel",),
        ),
        cost_estimate=pl.CostEstimate(
            flops=8 * b_pad * dim,
            transcendentals=b_pad * dim,
            bytes_accessed=b_pad * dim * out_bytes + (b_pad + 2 * dim) * 4,
        ),
    )(x2d, table, shift)

    if b_pad != B:
        # TODO(synk): this slice can cost an extra HBM pass if it does not fuse
        # into the consumer; callers that tolerate a padded batch should take
        # the (b_pad, dim) slab directly.
        out = out[:B]
    return out


if __name__ == "__main__":
    num_steps = 1000
    dim = 128            # half_dim = 64: single full-width store stays lane-dense
    rescale_steps = 4000
    B = 40               # not a multiple of the tile -> exercises tail padding

    key = jax.random.PRNGKey(0)
    x = jax.random.randint(key, (B,), 0, num_steps).astype(jnp.float32)

    # Force the Pallas path (auto-dispatch would pick the fused JAX path here).
    out = sinusoidal_pos_emb(x, num_steps=num_steps, dim=dim,
                             rescale_steps=rescale_steps, use_pallas=True)
    out = jax.block_until_ready(out)

    ref = _reference(x, num_steps, dim, rescale_steps)
    assert out.shape == (B, dim)
    # Phases reach ~4000 rad in f32: folded rescale constant + Mosaic-vs-XLA
    # transcendental paths differ by a few ULPs of the phase (~1e-3 in sin/cos).
    max_err = float(jnp.max(jnp.abs(out - ref)))
    assert max_err < 1e-2, f"mismatch vs reference: max abs err {max_err}"

    print("KERNEL_OK")
</pallas_src>

<mosaic_0001>
module attributes {stable_mosaic.version = 11 : i64} {
  func.func @_sinusoidal_kernel(%arg0: i32, %arg1: memref<24x1xf32, #tpu.memory_space<vmem>>, %arg2: memref<1x128xf32, #tpu.memory_space<vmem>>, %arg3: memref<1x128xf32, #tpu.memory_space<vmem>>, %arg4: memref<24x128xf32, #tpu.memory_space<vmem>>) attributes {dimension_semantics = [#tpu.dimension_semantics<parallel>], iteration_bounds = array<i64: 2>, scalar_prefetch = 0 : i64, scratch_operands = 0 : i64, tpu.core_type = #tpu.core_type<tc>, window_params = [{transform_indices = @transform_0, window_bounds = array<i64: 24, 1>}, {pipeline_mode = #tpu.pipeline_mode<synchronous>, transform_indices = @transform_1, window_bounds = array<i64: 1, 128>}, {pipeline_mode = #tpu.pipeline_mode<synchronous>, transform_indices = @transform_2, window_bounds = array<i64: 1, 128>}, {transform_indices = @transform_3, window_bounds = array<i64: 24, 128>}]} {
    %c0 = arith.constant 0 : index
    %c0_0 = arith.constant 0 : index
    %0 = vector.load %arg1[%c0, %c0_0] : memref<24x1xf32, #tpu.memory_space<vmem>>, vector<24x1xf32>
    %c0_1 = arith.constant 0 : index
    %c0_2 = arith.constant 0 : index
    %1 = vector.load %arg2[%c0_1, %c0_2] : memref<1x128xf32, #tpu.memory_space<vmem>>, vector<1x128xf32>
    %2 = vector.broadcast %0 : vector<24x1xf32> to vector<24x128xf32>
    %3 = vector.broadcast %1 : vector<1x128xf32> to vector<24x128xf32>
    %4 = arith.mulf %2, %3 : vector<24x128xf32>
    %c0_3 = arith.constant 0 : index
    %c0_4 = arith.constant 0 : index
    %5 = vector.load %arg3[%c0_3, %c0_4] : memref<1x128xf32, #tpu.memory_space<vmem>>, vector<1x128xf32>
    %6 = vector.broadcast %5 : vector<1x128xf32> to vector<24x128xf32>
    %7 = arith.addf %4, %6 : vector<24x128xf32>
    %cst = arith.constant 0.159154937 : f32
    %8 = vector.broadcast %cst : f32 to vector<24x128xf32>
    %9 = arith.mulf %7, %8 : vector<24x128xf32>
    %cst_5 = arith.constant 5.000000e-01 : f32
    %10 = vector.broadcast %cst_5 : f32 to vector<24x128xf32>
    %11 = arith.addf %9, %10 : vector<24x128xf32>
    %12 = math.floor %11 : vector<24x128xf32>
    %cst_6 = arith.constant 6.281250e+00 : f32
    %13 = vector.broadcast %cst_6 : f32 to vector<24x128xf32>
    %14 = arith.mulf %12, %13 : vector<24x128xf32>
    %15 = arith.subf %7, %14 : vector<24x128xf32>
    %cst_7 = arith.constant 0.00193530717 : f32
    %16 = vector.broadcast %cst_7 : f32 to vector<24x128xf32>
    %17 = arith.mulf %12, %16 : vector<24x128xf32>
    %18 = arith.subf %15, %17 : vector<24x128xf32>
    %19 = math.sin %18 : vector<24x128xf32>
    %c0_8 = arith.constant 0 : index
    %c0_9 = arith.constant 0 : index
    %20 = vector.load %arg4[%c0_8, %c0_9] : memref<24x128xf32, #tpu.memory_space<vmem>>, vector<24x128xf32>
    tpu.vector_store %arg4[%c0_8, %c0_9], %19 {strides = array<i32>} : memref<24x128xf32, #tpu.memory_space<vmem>>, vector<24x128xf32>,
    return
  }
  func.func @transform_0(%arg0: i32) -> (i32, i32) {
    %c0_i32 = arith.constant 0 : i32
    %c0_i32_0 = arith.constant 0 : i32
    return %arg0, %c0_i32 : i32, i32
  }
  func.func @transform_1(%arg0: i32) -> (i32, i32) {
    %c0_i32 = arith.constant 0 : i32
    %c0_i32_0 = arith.constant 0 : i32
    %c0_i32_1 = arith.constant 0 : i32
    return %c0_i32, %c0_i32_0 : i32, i32
  }
  func.func @transform_2(%arg0: i32) -> (i32, i32) {
    %c0_i32 = arith.constant 0 : i32
    %c0_i32_0 = arith.constant 0 : i32
    %c0_i32_1 = arith.constant 0 : i32
    return %c0_i32, %c0_i32_0 : i32, i32
  }
  func.func @transform_3(%arg0: i32) -> (i32, i32) {
    %c0_i32 = arith.constant 0 : i32
    %c0_i32_0 = arith.constant 0 : i32
    return %arg0, %c0_i32 : i32, i32
  }
}

</mosaic_0001>

<bundles_post_ra>
// kernel: tpu_custom_call.1
= control target key start
LH: loop header
LB: loop body
LE: loop exit
PB: predicated region body
PF: predicated region fallthrough
CT: control target
= control target key end

     0   :  { %8 = vsyncpa [#allocation3], 0  ;;  %s1105_s0 = inlined_call_operand.vmem [shape: f32[48,1], index: 0, kind: input, shape index: {}]   ;;  %s1106_s1 = inlined_call_operand.vmem [shape: f32[1,128], index: 1, kind: input, shape index: {}]   ;;  %s1107_s2 = inlined_call_operand.vmem [shape: f32[1,128], index: 2, kind: input, shape index: {}]   ;;  %s1108_s3 = inlined_call_operand.hbm [shape: f32[48,128], index: 3, kind: output, shape index: {}]  }
   0x1   :  { %10 = vsyncpa [#allocation3 + $0x1], 0  ;;  %s812_s12 = smov 0   ;;  %s814_s13 = smov 0  }
   0x2   :  { %s816_s14 = smov 0   ;;  %s818_s15 = smov 0  }
   0x3 LB: > { %s833_s16 = sadd.s32 4294967295, %s780_s15   ;;  %s622_s17 = sadd.s32 4294967294, %s780_s15   ;;  %s780_s15 = sphi %s818_s15, %s1118_s15   ;;  %s776_s14 = sphi %s816_s14, %s1117_s14   ;;  %s772_s13 = sphi %s814_s13, %s1116_s13   ;;  %s768_s12 = sphi %s812_s12, %s1115_s12  }
   0x4   : > { %s837_s18 = sadd.s32 1, %s780_s15   ;;  %s91_s19 = sadd.s32 1, %s776_s14 }
   0x5   : > { %s88_s20 = ssub.s32 %s780_s15, %s837_s18  ;;  %p101_p0 = scmp.ne.s32.totalorder %s776_s14, %s772_s13 }
   0x6   : > { %p89_p1 = scmp.eq.s32.totalorder %s88_s20, 0  ;;  %p102_p2 = scmp.eq.s32.totalorder %s833_s16, 1 }
   0x7   : > { %p107_p3 = scmp.ne.s32.totalorder %s772_s13, %s768_s12  ;;  %p108_p4 = scmp.eq.s32.totalorder %s622_s17, 1 }
   0x8   : > { %s848_s21 = scalar_select %p89_p1, %s776_s14, %s91_s19  }
   0x9   : > { %p850_p5 = por %p102_p2, %p101_p0  ;;  %p854_p6 = por %p108_p4, %p107_p3 }
   0xa   : > { %p625_p7 = scmp.ge.s32.totalorder %s780_s15, 1  ;;  %p141_p8 = scmp.lt.s32.totalorder %s780_s15, 3 }
   0xc   : > { %p142_p9 = pnand %p625_p7, %p141_p8 }
   0xd   : > { %s165_s24 = smul.u32 (!%p142_p9), 3, %s833_s16  ;;  %s162_s6 = sand.u32 (!%p142_p9), 1, %s772_s13  }
   0xe   : > { %145 = sbr.rel (%p142_p9) target bundleno = 288 (0x120), region = 32 }
   0xf   : > { %p166_p10 = scmp.lt.s32.totalorder (!%p142_p9), %s165_s24, 5  ;;  %s645_s7 = smul.u32 (!%p142_p9), 24, %s162_s6 }
  0x10   : > { %s644_s9 = smul.u32 (!%p142_p9), 384, %s833_s16  ;;  %s1065_s16 = scalar_lea.sflag (!%p142_p9), [#allocation3], %s162_s6 }
  0x11   : > { %s1041_s8 = scalar_lea.vmem (!%p142_p9), [#allocation2], %s645_s7 }
  0x12   : > { %s560_s10 = sshll.u32 (!%p142_p9), %s1041_s8, 4  ;;  %s1057_s19 = scalar_lea.hbm (!%p142_p9), %s1108_s3, %s644_s9  ;;  %s1059_s10 = int_to_ptr.vmem [resolvable:$true] %s560_s10 }
  0x13   : > { %v782_v0 = vmov 0   ;;  %s1120_s24 = smov (!%p166_p10, %s165_s24), 5  ;;  %v627_v4 = vld [vmem:[%s1106_s1] ss:$0 sm:$0xff]  ;;  %v783_v60 = vmov 683565275  }
  0x14   : > { %707 = vset.pattern.permute.xlu1 %v782_v0  ;;  %706 = vset.pattern.permute.xlu0 %v782_v0  ;;  %s626_s25 = sshll.u32 %s1120_s24, 3  ;;  %v628_v5 = vld [vmem:[%s1107_s2] ss:$0 sm:$0xff]  ;;  %v784_v0 = vmov 2475754826   ;;  %s720_s20 = scalar_lea.vmem %s1059_s10, 384 }
  0x15   : > { %s169_s28 = scalar_lea.vmem %s1105_s0, %s626_s25  ;;  %p721_p11 = scmp.ne.s32.totalorder %s1059_s10, %s720_s20 }
  0x16   : > { %v174_v1 = vld [vmem:[%s169_s28 + $0x10] sm:$0xff]  ;;  %v172_v2 = vld [vmem:[%s169_s28] sm:$0xff]  ;;  %v173_v3 = vld [vmem:[%s169_s28 + $0x8] sm:$0xff]  ;;  %s789_s24 = smov [#allocation2]  }
  0x17   : > { %188 = vperm.xlu1 %707, %v174_v1   ;;  %178 = vperm.xlu0 %706, %v172_v2   ;;  %v785_v2 = vmov 2131351028   ;;  %p722_p12 = pnand %p721_p11, %p850_p5  ;;  %s724_s25 = sshll.u32 %s789_s24, 4  ;;  %s725_s25 = int_to_ptr.vmem [resolvable:$false] %s724_s25 }
  0x18   : > { %s726_s26 = scalar_lea.vmem %s725_s25, 768  ;;  %p727_p0 = scmp.lt.s32.totalorder %s1059_s10, %s725_s25 }
  0x19   : > { %p723_p13 = pneg %p722_p12  ;;  %p728_p1 = scmp.lt.s32.totalorder %s726_s26, %s720_s20 }
  0x1b   : > { %183 = vperm.xlu0 %706, %v173_v3   ;;  %p729_p2 = por %p728_p1, %p727_p0 }
  0x1d   : > { %p730_p3 = pnand %p729_p2, %p723_p13 }
  0x92   : > { %v189_v6 = vpop.permute.xlu1 %188  ;;  %v179_v7 = vpop.permute.xlu0 %178 }
  0x93   : > { %v199_v8 = vmul.f32 %v627_v4, %v189_v6  ;;  %v197_v9 = vmul.f32 %v627_v4, %v179_v7  ;;  %v787_v6 = vmov 920167782  }
  0x95   : > { %v209_v10 = vadd.f32 %v628_v5, %v199_v8  ;;  %v207_v11 = vadd.f32 %v628_v5, %v197_v9 }
  0x96   : > { %v184_v12 = vpop.permute.xlu0 %183 }
  0x97   : > { %v212_v13 = vmul.f32 0.15915494, %v209_v10  ;;  %v210_v14 = vmul.f32 0.15915494, %v207_v11  ;;  %v198_v15 = vmul.f32 %v627_v4, %v184_v12  ;;  %v786_v4 = vmov 2102212464  }
  0x99   : > { %v215_v16 = vadd.f32 0.5, %v212_v13  ;;  %v213_v17 = vadd.f32 0.5, %v210_v14  ;;  %v208_v18 = vadd.f32 %v628_v5, %v198_v15  ;;  %v788_v13 = vmov 1326507024  }
  0x9b   : > { %v218_v19 = vfloor.f32 %v215_v16  ;;  %v216_v20 = vfloor.f32 %v213_v17  ;;  %v211_v21 = vmul.f32 0.15915494, %v208_v18 }
  0x9d   : > { %v221_v22 = vmul.f32 6.28125, %v218_v19  ;;  %v227_v23 = vmul.f32 0.0019353072, %v218_v19  ;;  %v219_v24 = vmul.f32 6.28125, %v216_v20  ;;  %v214_v25 = vadd.f32 0.5, %v211_v21 }
  0x9e   : > { %v225_v28 = vmul.f32 0.0019353072, %v216_v20 }
  0x9f   : > { %v224_v26 = vsub.f32 %v209_v10, %v221_v22  ;;  %v222_v27 = vsub.f32 %v207_v11, %v219_v24  ;;  %v217_v29 = vfloor.f32 %v214_v25 }
  0xa1   : > { %v870_v30 = vsub.f32 %v224_v26, %v227_v23  ;;  %v872_v31 = vsub.f32 %v222_v27, %v225_v28  ;;  %v220_v32 = vmul.f32 6.28125, %v217_v29  ;;  %v226_v38 = vmul.f32 0.0019353072, %v217_v29 }
  0xa3   : > { %v439_v33 = vand.u32 2147483647, %v870_v30  ;;  %v442_v34 = vand.u32 2139095040, %v870_v30  ;;  %v231_v35 = vand.u32 2147483647, %v872_v31  ;;  %v234_v36 = vand.u32 2139095040, %v872_v31 }
  0xa4   : > { %v223_v37 = vsub.f32 %v208_v18, %v220_v32 }
  0xa5   : > { %v443_v39 = vshrl.u32 %v442_v34, 23  ;;  %v446_v40 = vand.u32 8388607, %v439_v33  ;;  %v235_v41 = vshrl.u32 %v234_v36, 23  ;;  %v238_v42 = vand.u32 8388607, %v231_v35 }
  0xa6   : > { %v882_v43 = vsub.f32 %v223_v37, %v226_v38 }
  0xa7   : > { %v637_v44 = vadd.s32 4294967169, %v443_v39  ;;  %v629_v45 = vadd.s32 4294967169, %v235_v41  ;;  %v447_v48 = vor.u32 8388608, %v446_v40  ;;  %v239_v49 = vor.u32 8388608, %v238_v42 }
  0xa8   : > { %v338_v47 = vand.u32 2139095040, %v882_v43 }
  0xa9   : > { %v449_v46 = vadd.s32 1, %v637_v44  ;;  %v241_v50 = vadd.s32 1, %v629_v45  ;;  %v885_v56 = vshll.u32 %v447_v48, 8  ;;  %v887_v57 = vshll.u32 %v239_v49, 8 }
  0xaa   : > { %v339_v51 = vshrl.u32 %v338_v47, 23 }
  0xab   : > { %vm450_vm0 = vcmp.gt.s32.totalorder %v449_v46, 0  ;;  %vm242_vm1 = vcmp.gt.s32.totalorder %v241_v50, 0 }
  0xac   : > { %v451_v52 = vsel %vm450_vm0, %v449_v46, 0  ;;  %v243_v55 = vsel %vm242_vm1, %v241_v50, 0  ;;  %v889_v58 = vadd.s32 4294967169, %v339_v51 }
  0xad   : > { %v452_v53 = vshrl.u32 %v451_v52, 5  ;;  %v453_v54 = vand.u32 31, %v451_v52  ;;  %v892_v62 = vshrl.u32 %v243_v55, 5  ;;  %v245_v63 = vand.u32 31, %v243_v55 }
  0xaf   : > { %v454_v59 = vsub.s32 32, %v453_v54  ;;  %v456_v61 = vshll.u32 %v783_v60, %v453_v54  ;;  %v459_v1 = vshll.u32 %v784_v0, %v453_v54  ;;  %v462_v3 = vshll.u32 %v785_v2, %v453_v54 }
  0xb0   : > { %v465_v5 = vshll.u32 %v786_v4, %v453_v54  ;;  %v468_v7 = vshll.u32 %v787_v6, %v453_v54  ;;  %vm471_vm2 = vcmp.lt.s32.totalorder %v452_v53, 1  ;;  %vm472_vm3 = vcmp.lt.s32.totalorder %v452_v53, 2 }
  0xb1   : > { %v457_v8 = vshrl.u32 %v784_v0, %v454_v59  ;;  %v460_v9 = vshrl.u32 %v785_v2, %v454_v59  ;;  %v463_v10 = vshrl.u32 %v786_v4, %v454_v59  ;;  %v455_v11 = vshrl.u32 %v783_v60, %v454_v59 }
  0xb2   : > { %v466_v12 = vshrl.u32 %v787_v6, %v454_v59  ;;  %v469_v14 = vshrl.u32 %v788_v13, %v454_v59  ;;  %v246_v18 = vsub.s32 32, %v245_v63  ;;  %vm473_vm4 = vcmp.lt.s32.totalorder %v452_v53, 3 }
  0xb3   : > { %v458_v15 = vor.u32 %v457_v8, %v456_v61  ;;  %v461_v16 = vor.u32 %v460_v9, %v459_v1  ;;  %v464_v17 = vor.u32 %v463_v10, %v462_v3  ;;  %vm474_vm5 = vcmp.lt.s32.totalorder %v452_v53, 4 }
  0xb4   : > { %v467_v19 = vor.u32 %v466_v12, %v465_v5  ;;  %v470_v20 = vor.u32 %v469_v14, %v468_v7  ;;  %v248_v28 = vshll.u32 %v783_v60, %v245_v63  ;;  %v249_v34 = vshrl.u32 %v784_v0, %v246_v18 }
  0xb5   : > { %v475_v21 = vsel %vm471_vm2, %v455_v11, %v458_v15  ;;  %v476_v22 = vsel %vm474_vm5, %v464_v17, 2102212464  ;;  %v479_v23 = vsel %vm471_vm2, %v458_v15, %v461_v16  ;;  %v483_v24 = vsel %vm471_vm2, %v461_v16, %v464_v17 }
  0xb6   : > { %v477_v25 = vsel %vm473_vm4, %v461_v16, %v476_v22  ;;  %v480_v26 = vsel %vm474_vm5, %v467_v19, 920167782  ;;  %v484_v27 = vsel %vm474_vm5, %v470_v20, 1326507024  ;;  %v251_v36 = vshll.u32 %v784_v0, %v245_v63 }
  0xb7   : > { %v481_v29 = vsel %vm473_vm4, %v464_v17, %v480_v26  ;;  %v485_v32 = vsel %vm473_vm4, %v467_v19, %v484_v27  ;;  %v478_v37 = vsel %vm472_vm3, %v475_v21, %v477_v25  ;;  %v252_v40 = vshrl.u32 %v785_v2, %v246_v18 }
  0xb8   : > { %v482_v38 = vsel %vm472_vm3, %v479_v23, %v481_v29  ;;  %v486_v39 = vsel %vm472_vm3, %v483_v24, %v485_v32  ;;  %v250_v46 = vor.u32 %v249_v34, %v248_v28  ;;  %v254_v48 = vshll.u32 %v785_v2, %v245_v63 }
  0xb9   : > { %v915_v41 = vmul.u32.u64.low %v885_v56, %v486_v39  ;;  %v916_v42 = vmul.u32.u64.high %v885_v56, %v486_v39, %v915_v41  ;;  %v919_v44 = vmul.u32.u64.low %v885_v56, %v482_v38  ;;  %v920_v45 = vmul.u32.u64.high %v885_v56, %v482_v38, %v919_v44 }
  0xba   : > { %v253_v47 = vor.u32 %v252_v40, %v251_v36  ;;  %v255_v49 = vshrl.u32 %v786_v4, %v246_v18  ;;  %v247_v50 = vshrl.u32 %v783_v60, %v246_v18  ;;  %v257_v51 = vshll.u32 %v786_v4, %v245_v63 }
  0xbb   : > { %v258_v52 = vshrl.u32 %v787_v6, %v246_v18  ;;  %v261_v53 = vshrl.u32 %v788_v13, %v246_v18  ;;  %v494_v54 = vmul.u32 %v885_v56, %v478_v37  ;;  %v260_v59 = vshll.u32 %v787_v6, %v245_v63 }
  0xbc   : > { %v256_v55 = vor.u32 %v255_v49, %v254_v48  ;;  %vm263_vm6 = vcmp.lt.s32.totalorder %v892_v62, 1  ;;  %vm496_vm7 = vc.u32 %v916_v42, %v919_v44  ;;  %v497_v61 = vadd.s32 1, %v920_v45 }
  0xbd   : > { %v259_v1 = vor.u32 %v258_v52, %v257_v51  ;;  %vm264_vm8 = vcmp.lt.s32.totalorder %v892_v62, 2  ;;  %v262_v3 = vor.u32 %v261_v53, %v260_v59  ;;  %vm265_vm9 = vcmp.lt.s32.totalorder %v892_v62, 3 }
  0xbe   : > { %vm266_vm10 = vcmp.lt.s32.totalorder %v892_v62, 4  ;;  %v271_v5 = vsel %vm263_vm6, %v250_v46, %v253_v47  ;;  %v498_v56 = vsel %vm496_vm7, %v497_v61, %v920_v45  ;;  %v275_v8 = vsel %vm263_vm6, %v253_v47, %v256_v55 }
  0xbf   : > { %v268_v7 = vsel %vm266_vm10, %v256_v55, 2102212464  ;;  %v272_v63 = vsel %vm266_vm10, %v259_v1, 920167782  ;;  %v499_v9 = vadd.s32 %v498_v56, %v494_v54  ;;  %v267_v10 = vsel %vm263_vm6, %v247_v50, %v250_v46 }
  0xc0   : > { %v273_v11 = vsel %vm265_vm9, %v256_v55, %v272_v63  ;;  %v276_v12 = vsel %vm266_vm10, %v262_v3, 1326507024  ;;  %v269_v14 = vsel %vm265_vm9, %v253_v47, %v268_v7  ;;  %v345_v17 = vadd.s32 1, %v889_v58 }
  0xc1   : > { %v274_v15 = vsel %vm264_vm8, %v271_v5, %v273_v11  ;;  %v277_v16 = vsel %vm265_vm9, %v259_v1, %v276_v12  ;;  %v500_v18 = vadd.s32 536870912, %v499_v9  ;;  %v270_v25 = vsel %vm264_vm8, %v267_v10, %v269_v14 }
  0xc2   : > { %v278_v19 = vsel %vm264_vm8, %v275_v8, %v277_v16  ;;  %v945_v20 = vmul.u32.u64.low %v887_v57, %v274_v15  ;;  %v946_v21 = vmul.u32.u64.high %v887_v57, %v274_v15, %v945_v20  ;;  %vm346_vm11 = vcmp.gt.s32.totalorder %v345_v17, 0 }
  0xc3   : > { %v950_v22 = vmul.u32.u64.low %v887_v57, %v278_v19  ;;  %v951_v23 = vmul.u32.u64.high %v887_v57, %v278_v19, %v950_v22  ;;  %v953_v24 = vshrl.u32 %v500_v18, 30  ;;  %v347_v58 = vsel %vm346_vm11, %v345_v17, 0 }
  0xc4   : > { %v335_v26 = vand.u32 2147483647, %v882_v43  ;;  %v349_v27 = vand.u32 31, %v347_v58  ;;  %v289_v29 = vadd.s32 1, %v946_v21  ;;  %v286_v32 = vmul.u32 %v887_v57, %v270_v25 }
  0xc5   : > { %v502_v28 = vshll.u32 %v953_v24, 30  ;;  %vm288_vm12 = vc.u32 %v951_v23, %v945_v20  ;;  %v348_v41 = vshrl.u32 %v347_v58, 5  ;;  %v495_v15 = vadd.s32 %v919_v44, %v916_v42 }
  0xc6   : > { %v350_v34 = vsub.s32 32, %v349_v27  ;;  %v290_v37 = vsel %vm288_vm12, %v289_v29, %v946_v21  ;;  %v342_v62 = vand.u32 8388607, %v335_v26  ;;  %v352_v45 = vshll.u32 %v783_v60, %v349_v27 }
  0xc7   : > { %v503_v36 = vsub.s32 %v499_v9, %v502_v28  ;;  %v291_v38 = vadd.s32 %v290_v37, %v286_v32  ;;  %v355_v47 = vshll.u32 %v784_v0, %v349_v27  ;;  %v358_v48 = vshll.u32 %v785_v2, %v349_v27 }
  0xc8   : > { %v353_v39 = vshrl.u32 %v784_v0, %v350_v34  ;;  %v356_v46 = vshrl.u32 %v785_v2, %v350_v34  ;;  %v359_v49 = vshrl.u32 %v786_v4, %v350_v34  ;;  %v361_v52 = vshll.u32 %v786_v4, %v349_v27 }
  0xc9   : > { %v505_v40 = vsub.s32 0, %v503_v36  ;;  %v292_v57 = vadd.s32 536870912, %v291_v38  ;;  %v362_v53 = vshrl.u32 %v787_v6, %v350_v34  ;;  %v365_v61 = vshrl.u32 %v788_v13, %v350_v34 }
  0xca   : > { %v354_v51 = vor.u32 %v353_v39, %v352_v45  ;;  %v357_v55 = vor.u32 %v356_v46, %v355_v47  ;;  %v360_v59 = vor.u32 %v359_v49, %v358_v48  ;;  %v364_v0 = vshll.u32 %v787_v6, %v349_v27 }
  0xcb   : > { %v638_v50 = vmin.u32 %v505_v40, %v503_v36  ;;  %v974_v54 = vshrl.u32 %v292_v57, 30  ;;  %v363_v3 = vor.u32 %v362_v53, %v361_v52  ;;  %v343_v5 = vor.u32 8388608, %v342_v62 }
  0xcc   : > { %v351_v56 = vshrl.u32 %v783_v60, %v350_v34  ;;  %vm367_vm13 = vcmp.lt.s32.totalorder %v348_v41, 1  ;;  %v366_v4 = vor.u32 %v365_v61, %v364_v0  ;;  %vm369_vm14 = vcmp.lt.s32.totalorder %v348_v41, 3 }
  0xcd   : > { %v507_v1 = vclz %v638_v50  ;;  %v294_v2 = vshll.u32 %v974_v54, 30  ;;  %vm370_vm15 = vcmp.lt.s32.totalorder %v348_v41, 4  ;;  %v375_v9 = vsel %vm367_vm13, %v354_v51, %v357_v55 }
  0xce   : > { %v372_v8 = vsel %vm370_vm15, %v360_v59, 2102212464  ;;  %v376_v13 = vsel %vm370_vm15, %v363_v3, 920167782  ;;  %v371_v6 = vsel %vm367_vm13, %v351_v56, %v354_v51  ;;  %vm368_vm1 = vcmp.lt.s32.totalorder %v348_v41, 2 }
  0xcf   : > { %v639_v7 = vadd.s32 4294967294, %v507_v1  ;;  %v295_v63 = vsub.s32 %v291_v38, %v294_v2  ;;  %v373_v10 = vsel %vm369_vm14, %v357_v55, %v372_v8  ;;  %v377_v11 = vsel %vm369_vm14, %v360_v59, %v376_v13 }
  0xd0   : > { %v383_v14 = vshll.u32 %v343_v5, 8  ;;  %v378_v18 = vsel %vm368_vm1, %v375_v9, %v377_v11  ;;  %v374_v21 = vsel %vm368_vm1, %v371_v6, %v373_v10  ;;  %v379_v22 = vsel %vm367_vm13, %v357_v55, %v360_v59 }
  0xd1   : > { %vm640_vm0 = vcmp.lt.s32.totalorder %v639_v7, 0  ;;  %v297_v12 = vsub.s32 0, %v295_v63  ;;  %v380_v25 = vsel %vm370_vm15, %v366_v4, 1326507024  ;;  %v287_v48 = vadd.s32 %v945_v20, %v951_v23 }
  0xd2   : > { %v510_v60 = vsel %vm640_vm0, 0, %v639_v7  ;;  %v381_v29 = vsel %vm369_vm14, %v363_v3, %v380_v25  ;;  %v991_v37 = vmul.u32.u64.low %v383_v14, %v378_v18  ;;  %v992_v38 = vmul.u32.u64.high %v383_v14, %v378_v18, %v991_v37 }
  0xd3   : > { %v511_v16 = vsub.s32 32, %v510_v60  ;;  %v515_v17 = vsub.s32 4294967266, %v510_v60  ;;  %v630_v19 = vmin.u32 %v297_v12, %v295_v63  ;;  %v512_v58 = vshll.u32 %v503_v36, %v510_v60 }
  0xd4   : > { %v382_v34 = vsel %vm368_vm1, %v379_v22, %v381_v29  ;;  %v390_v46 = vmul.u32 %v383_v14, %v374_v21  ;;  %v393_v36 = vadd.s32 1, %v992_v38  ;;  %vm441_vm4 = vcmp.lt.s32.totalorder %v870_v30, 0 }
  0xd5   : > { %v513_v27 = vshrl.u32 %v495_v15, %v511_v16  ;;  %v516_v28 = vadd.s32 127, %v515_v17  ;;  %v299_v32 = vclz %v630_v19  ;;  %v525_v0 = vsub.s32 4, %v953_v24 }
  0xd6   : > { %v995_v62 = vmul.u32.u64.low %v383_v14, %v382_v34  ;;  %v996_v39 = vmul.u32.u64.high %v383_v14, %v382_v34, %v995_v62  ;;  %vm1008_vm5 = vcmp.le.f32.partialorder %v439_v33, 0.7853982  ;;  %v317_v12 = vsub.s32 4, %v974_v54 }
  0xd7   : > { %v514_v42 = vor.u32 %v513_v27, %v512_v58  ;;  %v517_v44 = vshll.u32 %v516_v28, 23  ;;  %v631_v40 = vadd.s32 4294967294, %v299_v32  ;;  %v526_v8 = vsel %vm441_vm4, %v525_v0, %v953_v24 }
  0xd8   : > { %vm392_vm3 = vc.u32 %v996_v39, %v991_v37  ;;  %v528_v10 = vsel %vm1008_vm5, 0, %v526_v8  ;;  %vm233_vm6 = vcmp.lt.s32.totalorder %v872_v31, 0  ;;  %vm1025_vm7 = vcmp.le.f32.partialorder %v231_v35, 0.7853982 }
  0xd9   : > { %v518_v45 = vor.u32 4788187, %v517_v44  ;;  %vm632_vm2 = vcmp.lt.s32.totalorder %v631_v40, 0  ;;  %v521_v41 = vcvt.s32.f32 %v514_v42  ;;  %v394_v51 = vsel %vm392_vm3, %v393_v36, %v992_v38 }
  0xda   : > { %v302_v47 = vsel %vm632_vm2, 0, %v631_v40  ;;  %v395_v53 = vadd.s32 %v394_v51, %v390_v46  ;;  %v532_v15 = vadd.s32 3, %v528_v10  ;;  %v318_v19 = vsel %vm233_vm6, %v317_v12, %v974_v54 }
  0xdb   : > { %v519_v57 = vand.u32 2147483647, %v518_v45  ;;  %v303_v49 = vsub.s32 32, %v302_v47  ;;  %v307_v50 = vsub.s32 4294967266, %v302_v47  ;;  %v304_v55 = vshll.u32 %v295_v63, %v302_v47 }
  0xdc   : > { %v396_v3 = vadd.s32 536870912, %v395_v53  ;;  %v533_v22 = vand.u32 3, %v532_v15  ;;  %v320_v25 = vsel %vm1025_vm7, 0, %v318_v19  ;;  %v391_v28 = vadd.s32 %v991_v37, %v996_v39 }
  0xdd   : > { %v522_v52 = vmul.f32 %v521_v41, %v519_v57  ;;  %v305_v59 = vshrl.u32 %v287_v48, %v303_v49  ;;  %v308_v61 = vadd.s32 127, %v307_v50  ;;  %v324_v34 = vadd.s32 3, %v320_v25 }
  0xde   : > { %v1012_v56 = vshrl.u32 %v396_v3, 30  ;;  %vm535_vm9 = vcmp.eq.s32.totalorder %v533_v22, 0  ;;  %vm538_vm10 = vcmp.eq.s32.totalorder %v533_v22, 2  ;;  %vm534_vm11 = vcmp.lt.s32.totalorder %v533_v22, 2 }
  0xdf   : > { %v523_v1 = vxor.u32 2147483648, %v522_v52  ;;  %v306_v2 = vor.u32 %v305_v59, %v304_v55  ;;  %v309_v5 = vshll.u32 %v308_v61, 23  ;;  %vm531_vm12 = vweird.f32 %v870_v30 }
  0xe0   : > { %v398_v63 = vshll.u32 %v1012_v56, 30  ;;  %v325_v37 = vand.u32 3, %v324_v34  ;;  %vm337_vm0 = vcmp.lt.s32.totalorder %v882_v43, 0  ;;  %v421_v61 = vsub.s32 4, %v1012_v56 }
  0xe1   : > { %v524_v23 = vsel %vm441_vm4, %v523_v1, %v522_v52  ;;  %v310_v4 = vor.u32 4788187, %v309_v5  ;;  %v313_v13 = vcvt.s32.f32 %v306_v2  ;;  %vm323_vm1 = vweird.f32 %v872_v31 }
  0xe2   : > { %v527_v7 = vsel %vm1008_vm5, %v870_v30, %v524_v23  ;;  %v399_v33 = vsub.s32 %v395_v53, %v398_v63  ;;  %vm330_vm13 = vcmp.eq.s32.totalorder %v325_v37, 2  ;;  %vm327_vm14 = vcmp.eq.s32.totalorder %v325_v37, 0 }
  0xe3   : > { %708 = vcosq.f32 %v527_v7  ;;  %v311_v9 = vand.u32 2147483647, %v310_v4  ;;  %vm326_vm15 = vcmp.lt.s32.totalorder %v325_v37, 2  ;;  %vm336_vm2 = vcmp.le.f32.partialorder %v335_v26, 0.7853982 }
  0xe4   : > { %710 = vsinq.f32 %v527_v7  ;;  %v401_v11 = vsub.s32 0, %v399_v33  ;;  %v422_v5 = vsel %vm337_vm0, %v421_v61, %v1012_v56 }
  0xe5   : > { %v314_v6 = vmul.f32 %v313_v13, %v311_v9  ;;  %v424_v20 = vsel %vm336_vm2, 0, %v422_v5 }
  0xe6   : > { %v634_v14 = vmin.u32 %v401_v11, %v399_v33  ;;  %v428_v23 = vadd.s32 3, %v424_v20 }
  0xe7   : > { %v315_v60 = vxor.u32 2147483648, %v314_v6 }
  0xe8   : > { %v403_v18 = vclz %v634_v14  ;;  %v429_v7 = vand.u32 3, %v428_v23 }
  0xe9   : > { %v316_v16 = vsel %vm233_vm6, %v315_v60, %v314_v6  ;;  %vm427_vm6 = vweird.f32 %v882_v43 }
  0xea   : > { %v319_v17 = vsel %vm1025_vm7, %v872_v31, %v316_v16  ;;  %v635_v21 = vadd.s32 4294967294, %v403_v18  ;;  %vm434_vm3 = vcmp.eq.s32.totalorder %v429_v7, 2  ;;  %vm431_vm4 = vcmp.eq.s32.totalorder %v429_v7, 0 }
  0xeb   : > { %712 = vcosq.f32 %v319_v17  ;;  %vm430_vm5 = vcmp.lt.s32.totalorder %v429_v7, 2 }
  0xec   : > { %714 = vsinq.f32 %v319_v17  ;;  %vm636_vm8 = vcmp.lt.s32.totalorder %v635_v21, 0 }
  0xed   : > { %v406_v58 = vsel %vm636_vm8, 0, %v635_v21 }
  0xee   : > { %v407_v29 = vsub.s32 32, %v406_v58  ;;  %v411_v32 = vsub.s32 4294967266, %v406_v58  ;;  %v408_v42 = vshll.u32 %v399_v33, %v406_v58 }
  0xf0   : > { %v709_v35 = vpop.eup %708  ;;  %v409_v44 = vshrl.u32 %v391_v28, %v407_v29  ;;  %v412_v62 = vadd.s32 127, %v411_v32 }
  0xf1   : > { %v711_v27 = vpop.eup %710  ;;  %v539_v54 = vxor.u32 2147483648, %v709_v35 }
  0xf2   : > { %v536_v38 = vxor.u32 2147483648, %v711_v27  ;;  %v410_v46 = vor.u32 %v409_v44, %v408_v42  ;;  %v413_v36 = vshll.u32 %v412_v62, 23 }
  0xf3   : > { %v540_v40 = vsel %vm538_vm10, %v539_v54, %v711_v27 }
  0xf4   : > { %v537_v45 = vsel %vm535_vm9, %v709_v35, %v536_v38  ;;  %v414_v39 = vor.u32 4788187, %v413_v36  ;;  %v417_v49 = vcvt.s32.f32 %v410_v46 }
  0xf5   : > { %v541_v57 = vsel %vm534_vm11, %v537_v45, %v540_v40 }
  0xf6   : > { %v542_v41 = vsel %vm531_vm12, nan, %v541_v57  ;;  %v415_v48 = vand.u32 2147483647, %v414_v39 }
  0xf7   : > { %545 = vst [vmem:[%s1041_s8 + $0x10] sm:$0xff] %v542_v41 }
  0xf8   : > { %v713_v47 = vpop.eup %712  ;;  %v418_v52 = vmul.f32 %v417_v49, %v415_v48 }
  0xf9   : > { %v715_v50 = vpop.eup %714  ;;  %v331_v51 = vxor.u32 2147483648, %v713_v47 }
  0xfa   : > { %v328_v53 = vxor.u32 2147483648, %v715_v50  ;;  %v419_v30 = vxor.u32 2147483648, %v418_v52 }
  0xfb   : > { %v332_v55 = vsel %vm330_vm13, %v331_v51, %v715_v50 }
  0xfc   : > { %v329_v59 = vsel %vm327_vm14, %v713_v47, %v328_v53  ;;  %v420_v3 = vsel %vm337_vm0, %v419_v30, %v418_v52 }
  0xfd   : > { %v333_v1 = vsel %vm326_vm15, %v329_v59, %v332_v55  ;;  %v423_v2 = vsel %vm336_vm2, %v882_v43, %v420_v3 }
  0xfe   : > { %v334_v0 = vsel %vm323_vm1, nan, %v333_v1  ;;  %716 = vcosq.f32 %v423_v2 }
  0xff   : > { %543 = vst [vmem:[%s1041_s8] sm:$0xff] %v334_v0  ;;  %718 = vsinq.f32 %v423_v2 }
 0x10b   : > { %v717_v4 = vpop.eup %716 }
 0x10c   : > { %v719_v31 = vpop.eup %718  ;;  %v435_v63 = vxor.u32 2147483648, %v717_v4 }
 0x10d   : > { %v432_v26 = vxor.u32 2147483648, %v719_v31 }
 0x10e   : > { %v436_v8 = vsel %vm434_vm3, %v435_v63, %v719_v31 }
 0x10f   : > { %v433_v9 = vsel %vm431_vm4, %v717_v4, %v432_v26 }
 0x110   : > { %v437_v56 = vsel %vm430_vm5, %v433_v9, %v436_v8 }
 0x111   : > { %v438_v13 = vsel %vm427_vm6, nan, %v437_v56 }
 0x112   : > { %544 = vst [vmem:[%s1041_s8 + $0x8] sm:$0xff] %v438_v13 }
 0x113   : > { %733 = shalt.err (!%p730_p3)
}
 0x114   : > { %s734_s27 = scalar_lea.hbm %s1057_s19, 384  ;;  %s738_s30 = scalar_lea.hbm %s1108_s3, 768 }
 0x115   : > { %p735_p4 = scmp.ne.s32.totalorder %s1057_s19, %s734_s27  ;;  %p739_p9 = scmp.lt.s32.totalorder %s1057_s19, %s1108_s3 }
 0x116   : > { %p740_p10 = scmp.lt.s32.totalorder %s738_s30, %s734_s27 }
 0x117   : > { %p736_p7 = pnand %p735_p4, %p850_p5 }
 0x118   : > { %p741_p11 = por %p740_p10, %p739_p9 }
 0x119   : > { %p737_p8 = pneg %p736_p7 }
 0x11b   : > { %p742_p12 = pnand %p741_p11, %p737_p8 }
 0x11d   : > { %745 = shalt.err (!%p742_p12)
}
 0x11e   : > { %s790_s6 = smov 128   ;;  %s791_s7 = smov 8  }
 0x11f   : > { %658 = dma.vmem_to_hbm [thread:$0]  (%p850_p5), %s1059_s10, 384, %s1057_s19, %s1065_s16, %s790_s6, %s790_s6, %s791_s7  }
 0x120 PF: > { %p664_p13 = scmp.ge.s32.totalorder %s780_s15, 2  ;;  %s575_s8 = sand.u32 1, %s768_s12  }
 0x121   : > { %s576_s9 = scalar_lea.sflag [#allocation3], %s575_s8 }
 0x122   : > { %p661_p0 = pnand %p664_p13, %p854_p6 }
 0x124   : > { %p662_p1 = pneg %p661_p0 }
 0x126   : > { %763 = dma.done.wait (%p662_p1), %s576_s9, 384  }
 0x127   : > { %765 = vsyncadd (%p662_p1), %s576_s9, 4294966912  ;;  %p13_p2 = scmp.ge.s32.totalorder %s837_s18, 4   ;;  %s1115_s12 = smov %s772_s13 }
 0x128   : > { %s1116_s13 = smov %s776_s14  ;;  %s1117_s14 = smov %s848_s21 }
 0x129   : > { %s1118_s15 = smov %s837_s18  ;;  %15 = sbr.rel (!%p13_p2) target bundleno = 3 (0x3), region = 67 }
 0x12e   :  { %581 = vsyncpa [#allocation3], 1 }
 0x12f   :  { %583 = vsyncpa [#allocation3 + $0x1], 1 }

</bundles_post_ra>
